<compile_context>
chip_gen: v6e
topology: v6e:2x2x1
jax: 0.10.0
libtpu: 0.0.40
codegen_flags: <defaults>
</compile_context>

<pallas_src>
import functools

import jax
import jax.numpy as jnp
from jax.experimental import pallas as pl
from jax.experimental.pallas import tpu as pltpu

P_DROP = 0.1
KEEP_SCALE = 1.0 / (1.0 - P_DROP)
# keep an element iff its uint32 draw >= round(p * 2**32)
_DROP_THRESHOLD = int(round(P_DROP * (2 ** 32)))  # 429496730
NEG_SLOPE = 0.01  # F.leaky_relu default
LANE = 128
SUBLANE = 8


def _round_up(n, m):
    return (n + m - 1) // m * m


def _mlp_math(x, w1t, b1, w2t, b2, keep_bits_u32, out_dtype):
    """Shared math: Linear1 -> LeakyReLU -> inverted dropout -> Linear2."""
    # Linear 1 on the MXU, f32 accumulation; bias add / activation in f32.
    h = jnp.dot(x, w1t, preferred_element_type=jnp.float32) + b1
    # LeakyReLU (negative_slope = 0.01).
    h = jnp.where(h > 0, h, jnp.float32(NEG_SLOPE) * h)
    # Dropout p = 0.1, training mode, inverted scaling: one integer threshold
    # compare + one fused select/rescale.
    keep = keep_bits_u32 >= jnp.uint32(_DROP_THRESHOLD)
    h = jnp.where(keep, h * jnp.float32(KEEP_SCALE), jnp.float32(0.0))
    # Linear 2 into the lane-dense padded column space, f32 accumulation.
    y = jnp.dot(h.astype(w2t.dtype), w2t, preferred_element_type=jnp.float32) + b2
    return y.astype(out_dtype)


def classifier_kernel_rng(seed_ref, x_ref, w1t_ref, b1_ref, w2t_ref, b2_ref, o_ref):
    """TPU path: dropout mask generated on-chip; only a scalar seed is read."""
    block_b = x_ref.shape[0]
    h_pad = w1t_ref.shape[1]
    # Per-grid-step seed so every batch tile gets an independent mask.
    pltpu.prng_seed(seed_ref[0] + pl.program_id(0))
    bits = pltpu.prng_random_bits((block_b, h_pad))
    if bits.dtype != jnp.uint32:  # trace-time check; some versions return int32
        bits = pltpu.bitcast(bits, jnp.uint32)
    o_ref[...] = _mlp_math(x_ref[...], w1t_ref[...], b1_ref[...],
                           w2t_ref[...], b2_ref[...], bits, o_ref.dtype)


def classifier_kernel_bits(x_ref, w1t_ref, b1_ref, w2t_ref, b2_ref, bits_ref, o_ref):
    """Fallback path (non-TPU / interpret): bits are fed from jax.random."""
    o_ref[...] = _mlp_math(x_ref[...], w1t_ref[...], b1_ref[...],
                           w2t_ref[...], b2_ref[...], bits_ref[...], o_ref.dtype)


def prepare_params(w1, b1, w2, b2, matmul_dtype=jnp.bfloat16):
    """One-time parameter prep, hoisted out of the hot path.

    Transposes weights, lifts biases to rows, lane-pads the hidden dim (H->128)
    and output dim (D_out->128) with zeros, and casts matmul operands to
    `matmul_dtype` (bf16 by default: native MXU dtype on v5e/v6e/v7x; pass
    jnp.float32 for exact f32 parity with the PyTorch module).
    The zero padding is exact: padded hidden columns stay 0 through bias /
    LeakyReLU / dropout and the matching rows of w2^T are 0.
    """
    H, D_in = w1.shape
    D_out = w2.shape[0]
    H_pad = _round_up(H, LANE)
    D_out_pad = _round_up(D_out, LANE)

    w1t = jnp.zeros((D_in, H_pad), matmul_dtype)
    w1t = w1t.at[:, :H].set(jnp.transpose(w1).astype(matmul_dtype))      # (D_in, 128)
    b1r = jnp.zeros((1, H_pad), jnp.float32)
    b1r = b1r.at[:, :H].set(b1.astype(jnp.float32))                      # (1, 128)

    w2t = jnp.zeros((H_pad, D_out_pad), matmul_dtype)
    w2t = w2t.at[:H, :D_out].set(jnp.transpose(w2).astype(matmul_dtype))  # (128, 128)
    b2r = jnp.zeros((1, D_out_pad), jnp.float32)
    b2r = b2r.at[:, :D_out].set(b2.astype(jnp.float32))                  # (1, 128)
    return w1t, b1r, w2t, b2r, D_out


@functools.partial(jax.jit, static_argnames=("d_out",))
def _forward(x, w1t, b1r, w2t_pad, b2r_pad, seed, *, d_out):
    B, D_in = x.shape
    H_pad = w1t.shape[1]
    D_out_pad = w2t_pad.shape[1]
    mat_dtype = w1t.dtype

    # Batch tiling: large tiles (up to 1024 rows) amortize per-step overhead and
    # issue big DMAs; when the batch is big enough, force >= 2 grid steps so the
    # "parallel" axis can shard across v7x's two TensorCores.
    B_sub = _round_up(B, SUBLANE)
    block_b = min(1024, B_sub)
    if B_sub >= 2 * SUBLANE and B_sub // block_b < 2:
        block_b = _round_up((B_sub + 1) // 2, SUBLANE)
    B_pad = _round_up(B, block_b)

    x_p = x.astype(mat_dtype)
    if B_pad != B:
        x_p = jnp.pad(x_p, ((0, B_pad - B), (0, 0)))

    grid = (B_pad // block_b,)
    out_shape = jax.ShapeDtypeStruct((B_pad, D_out_pad), jnp.float32)
    itemsize = jnp.dtype(mat_dtype).itemsize
    cost = pl.CostEstimate(
        flops=2 * B_pad * H_pad * (D_in + D_out_pad),
        transcendentals=0,
        bytes_accessed=(B_pad * D_in * itemsize                       # x
                        + (D_in * H_pad + H_pad * D_out_pad) * itemsize  # weights
                        + (H_pad + D_out_pad) * 4                     # biases
                        + B_pad * D_out_pad * 4),                     # output
    )
    cparams = pltpu.CompilerParams(dimension_semantics=("parallel",))
    # TODO(synk): if the x DMA shows up exposed in a v7x trace, add
    # pipeline_mode=pl.Buffered(3) on the x BlockSpec.

    if jax.default_backend() == "tpu":
        # On-chip dropout RNG: only a scalar seed crosses HBM.
        seed_arr = jnp.asarray(seed, jnp.int32).reshape((1,))
        grid_spec = pltpu.PrefetchScalarGridSpec(
            num_scalar_prefetch=1,
            grid=grid,
            in_specs=[
                pl.BlockSpec((block_b, D_in), lambda i, s: (i, 0)),      # x
                pl.BlockSpec((D_in, H_pad), lambda i, s: (0, 0)),        # w1^T
                pl.BlockSpec((1, H_pad), lambda i, s: (0, 0)),           # b1
                pl.BlockSpec((H_pad, D_out_pad), lambda i, s: (0, 0)),   # w2^T
                pl.BlockSpec((1, D_out_pad), lambda i, s: (0, 0)),       # b2
            ],
            out_specs=pl.BlockSpec((block_b, D_out_pad), lambda i, s: (i, 0)),
        )
        out_pad = pl.pallas_call(
            classifier_kernel_rng,
            out_shape=out_shape,
            grid_spec=grid_spec,
            compiler_params=cparams,
            cost_estimate=cost,
        )(seed_arr, x_p, w1t, b1r, w2t_pad, b2r_pad)
    else:
        # Non-TPU / interpret fallback: pltpu PRNG has no CPU lowering, so feed
        # uint32 bits from the JAX PRNG (same threshold compare in-kernel).
        bits = jax.random.bits(jax.random.PRNGKey(seed), (B_pad, H_pad),
                               dtype=jnp.uint32)
        out_pad = pl.pallas_call(
            classifier_kernel_bits,
            out_shape=out_shape,
            grid=grid,
            in_specs=[
                pl.BlockSpec((block_b, D_in), lambda i: (i, 0)),
                pl.BlockSpec((D_in, H_pad), lambda i: (0, 0)),
                pl.BlockSpec((1, H_pad), lambda i: (0, 0)),
                pl.BlockSpec((H_pad, D_out_pad), lambda i: (0, 0)),
                pl.BlockSpec((1, D_out_pad), lambda i: (0, 0)),
                pl.BlockSpec((block_b, H_pad), lambda i: (i, 0)),
            ],
            out_specs=pl.BlockSpec((block_b, D_out_pad), lambda i: (i, 0)),
            compiler_params=cparams,
            cost_estimate=cost,
        )(x_p, w1t, b1r, w2t_pad, b2r_pad, bits)

    # (B, D_out) view for module parity.  Consumers that can accept the
    # lane-dense (B_pad, 128) slab should use out_pad directly to skip this
    # extra read+write pass.
    return out_pad[:B, :d_out]


def classifier_forward(x, params, dropout_seed):
    """x: (B, D_in). params: output of prepare_params(). dropout_seed: int32
    scalar (vary per training step so dropout masks are i.i.d. across calls).

    Note: dropout uses the TPU on-chip PRNG (or JAX PRNG on the fallback path),
    so outputs won't bit-match torch's RNG in training mode; the keep
    probability (0.9) and 1/(1-p) rescaling match F.dropout(p=0.1).
    """
    w1t, b1r, w2t_pad, b2r_pad, d_out = params
    return _forward(x, w1t, b1r, w2t_pad, b2r_pad,
                    jnp.asarray(dropout_seed, jnp.int32), d_out=d_out)


if __name__ == "__main__":
    # Small shapes consistent with the module: batch=8, input=32, hidden=64, output=16.
    # NOTE: at this demo size the pallas_call launch + DMA latency is the entire
    # runtime (one MXU pass of work); the tiling / RNG / dtype tuning above only
    # becomes observable at B >= ~4096.  This run is correctness-only.
    B, D_IN, HID, D_OUT = 8, 32, 64, 16

    key = jax.random.PRNGKey(0)
    kx, kw1, kb1, kw2, kb2 = jax.random.split(key, 5)

    x = jax.random.normal(kx, (B, D_IN), dtype=jnp.float32)

    # Deterministic params (uniform(-1/sqrt(fan_in), 1/sqrt(fan_in)), like nn.Linear).
    lim1 = 1.0 / jnp.sqrt(jnp.float32(D_IN))
    w1 = jax.random.uniform(kw1, (HID, D_IN), jnp.float32, -lim1, lim1)
    b1 = jax.random.uniform(kb1, (HID,), jnp.float32, -lim1, lim1)
    lim2 = 1.0 / jnp.sqrt(jnp.float32(HID))
    w2 = jax.random.uniform(kw2, (D_OUT, HID), jnp.float32, -lim2, lim2)
    b2 = jax.random.uniform(kb2, (D_OUT,), jnp.float32, -lim2, lim2)

    # One-time prep outside the hot path (use matmul_dtype=jnp.float32 for
    # exact f32 parity; default bf16 targets the bf16-native MXUs).
    params = prepare_params(w1, b1, w2, b2)

    out = classifier_forward(x, params, dropout_seed=1234)
    out = jax.block_until_ready(out)

    assert out.shape == (B, D_OUT), out.shape
    assert bool(jnp.all(jnp.isfinite(out)))
    print("KERNEL_OK")
</pallas_src>

<mosaic_0001>
module attributes {stable_mosaic.version = 11 : i64} {
  func.func @classifier_kernel_bits(%arg0: i32, %arg1: memref<8x32xbf16, #tpu.memory_space<vmem>>, %arg2: memref<32x128xbf16, #tpu.memory_space<vmem>>, %arg3: memref<1x128xf32, #tpu.memory_space<vmem>>, %arg4: memref<128x128xbf16, #tpu.memory_space<vmem>>, %arg5: memref<1x128xf32, #tpu.memory_space<vmem>>, %arg6: memref<8x128xi32, #tpu.memory_space<vmem>>, %arg7: memref<8x128xf32, #tpu.memory_space<vmem>>) attributes {dimension_semantics = [#tpu.dimension_semantics<parallel>], iteration_bounds = array<i64: 1>, scalar_prefetch = 0 : i64, scratch_operands = 0 : i64, tpu.core_type = #tpu.core_type<tc>, window_params = [{transform_indices = @transform_0, window_bounds = array<i64: 8, 32>}, {pipeline_mode = #tpu.pipeline_mode<synchronous>, transform_indices = @transform_1, window_bounds = array<i64: 32, 128>}, {pipeline_mode = #tpu.pipeline_mode<synchronous>, transform_indices = @transform_2, window_bounds = array<i64: 1, 128>}, {pipeline_mode = #tpu.pipeline_mode<synchronous>, transform_indices = @transform_3, window_bounds = array<i64: 128, 128>}, {pipeline_mode = #tpu.pipeline_mode<synchronous>, transform_indices = @transform_4, window_bounds = array<i64: 1, 128>}, {transform_indices = @transform_5, window_bounds = array<i64: 8, 128>}, {transform_indices = @transform_6, window_bounds = array<i64: 8, 128>}]} {
    %c0 = arith.constant 0 : index
    %c0_0 = arith.constant 0 : index
    %0 = vector.load %arg1[%c0, %c0_0] : memref<8x32xbf16, #tpu.memory_space<vmem>>, vector<8x32xbf16>
    %c0_1 = arith.constant 0 : index
    %c0_2 = arith.constant 0 : index
    %1 = vector.load %arg2[%c0_1, %c0_2] : memref<32x128xbf16, #tpu.memory_space<vmem>>, vector<32x128xbf16>
    %c0_3 = arith.constant 0 : index
    %c0_4 = arith.constant 0 : index
    %2 = vector.load %arg3[%c0_3, %c0_4] : memref<1x128xf32, #tpu.memory_space<vmem>>, vector<1x128xf32>
    %c0_5 = arith.constant 0 : index
    %c0_6 = arith.constant 0 : index
    %3 = vector.load %arg4[%c0_5, %c0_6] : memref<128x128xbf16, #tpu.memory_space<vmem>>, vector<128x128xbf16>
    %c0_7 = arith.constant 0 : index
    %c0_8 = arith.constant 0 : index
    %4 = vector.load %arg5[%c0_7, %c0_8] : memref<1x128xf32, #tpu.memory_space<vmem>>, vector<1x128xf32>
    %c0_9 = arith.constant 0 : index
    %c0_10 = arith.constant 0 : index
    %5 = vector.load %arg6[%c0_9, %c0_10] : memref<8x128xi32, #tpu.memory_space<vmem>>, vector<8x128xi32>
    %cst = arith.constant dense<0.000000e+00> : vector<8x128xf32>
    %6 = tpu.matmul %0, %1, %cst {dimension_numbers = #tpu.dot_dimension_numbers<[1], [0], [0], [1], [0, 0, 1, 1], [], []>} : vector<8x32xbf16>, vector<32x128xbf16>, vector<8x128xf32> -> vector<8x128xf32>
    %7 = vector.broadcast %2 : vector<1x128xf32> to vector<8x128xf32>
    %8 = arith.addf %6, %7 : vector<8x128xf32>
    %cst_11 = arith.constant 0.000000e+00 : f32
    %9 = vector.broadcast %cst_11 : f32 to vector<8x128xf32>
    %10 = arith.cmpf ogt, %8, %9 : vector<8x128xf32>
    %cst_12 = arith.constant 0.00999999977 : f32
    %11 = vector.broadcast %cst_12 : f32 to vector<8x128xf32>
    %12 = arith.mulf %11, %8 : vector<8x128xf32>
    %13 = arith.select %10, %8, %12 : vector<8x128xi1>, vector<8x128xf32>
    %c429496730_i32 = arith.constant 429496730 : i32
    %14 = vector.broadcast %c429496730_i32 : i32 to vector<8x128xi32>
    %15 = arith.cmpi uge, %5, %14 : vector<8x128xi32>
    %cst_13 = arith.constant 1.11111116 : f32
    %16 = vector.broadcast %cst_13 : f32 to vector<8x128xf32>
    %17 = arith.mulf %13, %16 : vector<8x128xf32>
    %cst_14 = arith.constant 0.000000e+00 : f32
    %18 = vector.broadcast %cst_14 : f32 to vector<8x128xf32>
    %19 = arith.select %15, %17, %18 : vector<8x128xi1>, vector<8x128xf32>
    %20 = arith.truncf %19 : vector<8x128xf32> to vector<8x128xbf16>
    %cst_15 = arith.constant dense<0.000000e+00> : vector<8x128xf32>
    %21 = tpu.matmul %20, %3, %cst_15 {dimension_numbers = #tpu.dot_dimension_numbers<[1], [0], [0], [1], [0, 0, 1, 1], [], []>} : vector<8x128xbf16>, vector<128x128xbf16>, vector<8x128xf32> -> vector<8x128xf32>
    %22 = vector.broadcast %4 : vector<1x128xf32> to vector<8x128xf32>
    %23 = arith.addf %21, %22 : vector<8x128xf32>
    %c0_16 = arith.constant 0 : index
    %c0_17 = arith.constant 0 : index
    %24 = vector.load %arg7[%c0_16, %c0_17] : memref<8x128xf32, #tpu.memory_space<vmem>>, vector<8x128xf32>
    tpu.vector_store %arg7[%c0_16, %c0_17], %23 {strides = array<i32>} : memref<8x128xf32, #tpu.memory_space<vmem>>, vector<8x128xf32>,
    return
  }
  func.func @transform_0(%arg0: i32) -> (i32, i32) {
    %c0_i32 = arith.constant 0 : i32
    %c0_i32_0 = arith.constant 0 : i32
    return %arg0, %c0_i32 : i32, i32
  }
  func.func @transform_1(%arg0: i32) -> (i32, i32) {
    %c0_i32 = arith.constant 0 : i32
    %c0_i32_0 = arith.constant 0 : i32
    %c0_i32_1 = arith.constant 0 : i32
    return %c0_i32, %c0_i32_0 : i32, i32
  }
  func.func @transform_2(%arg0: i32) -> (i32, i32) {
    %c0_i32 = arith.constant 0 : i32
    %c0_i32_0 = arith.constant 0 : i32
    %c0_i32_1 = arith.constant 0 : i32
    return %c0_i32, %c0_i32_0 : i32, i32
  }
  func.func @transform_3(%arg0: i32) -> (i32, i32) {
    %c0_i32 = arith.constant 0 : i32
    %c0_i32_0 = arith.constant 0 : i32
    %c0_i32_1 = arith.constant 0 : i32
    return %c0_i32, %c0_i32_0 : i32, i32
  }
  func.func @transform_4(%arg0: i32) -> (i32, i32) {
    %c0_i32 = arith.constant 0 : i32
    %c0_i32_0 = arith.constant 0 : i32
    %c0_i32_1 = arith.constant 0 : i32
    return %c0_i32, %c0_i32_0 : i32, i32
  }
  func.func @transform_5(%arg0: i32) -> (i32, i32) {
    %c0_i32 = arith.constant 0 : i32
    %c0_i32_0 = arith.constant 0 : i32
    return %arg0, %c0_i32 : i32, i32
  }
  func.func @transform_6(%arg0: i32) -> (i32, i32) {
    %c0_i32 = arith.constant 0 : i32
    %c0_i32_0 = arith.constant 0 : i32
    return %arg0, %c0_i32 : i32, i32
  }
}

</mosaic_0001>

<bundles_post_ra>
// kernel: _forward.1
= control target key start
LH: loop header
LB: loop body
LE: loop exit
PB: predicated region body
PF: predicated region fallthrough
CT: control target
= control target key end

     0   :  { %11 = vsyncpa [#allocation3], 0  ;;  %s423_s0 = inlined_call_operand.vmem [shape: bf16[8,32], index: 0, kind: input, shape index: {}]   ;;  %s424_s1 = inlined_call_operand.vmem [shape: bf16[32,128], index: 1, kind: input, shape index: {}]   ;;  %s425_s2 = inlined_call_operand.vmem [shape: f32[1,128], index: 2, kind: input, shape index: {}]   ;;  %s426_s3 = inlined_call_operand.hbm [shape: bf16[128,128], index: 3, kind: input, shape index: {}]   ;;  %s427_s4 = inlined_call_operand.vmem [shape: f32[1,128], index: 4, kind: input, shape index: {}]   ;;  %s428_s5 = inlined_call_operand.vmem [shape: u32[8,128], index: 5, kind: input, shape index: {}]   ;;  %s429_s6 = inlined_call_operand.hbm [shape: f32[8,128], index: 6, kind: output, shape index: {}]  }
   0x1   :  { %12 = vsyncpa [#allocation4], 0  ;;  %s358_s21 = smov [#allocation2]  }
   0x2   :  { %s24_s22 = sshll.u32 %s358_s21, 4  ;;  %s25_s22 = int_to_ptr.vmem [resolvable:$true] %s24_s22 }
   0x3   :  { %s322_s23 = scalar_lea.vmem %s25_s22, 1024  ;;  %p327_p1 = scmp.lt.s32.totalorder %s25_s22, %s25_s22 }
   0x4   :  { %p323_p0 = scmp.ne.s32.totalorder %s25_s22, %s322_s23  ;;  %p328_p2 = scmp.lt.s32.totalorder %s322_s23, %s322_s23 }
   0x6   :  { %p329_p3 = por %p328_p2, %p327_p1 }
   0x8   :  { %p330_p4 = pnand %p329_p3, %p323_p0 }
   0xa   :  { %333 = shalt.err (!%p330_p4)
}
   0xb   :  { %s359_s24 = smov 64   ;;  %s360_s25 = smov 4  }
   0xc   :  { %30 = dma.hbm_to_vmem [thread:$0]  %s426_s3, 1024, %s25_s22, [#allocation3], %s359_s24, %s359_s24, %s360_s25  }
   0xd   :  { %354 = dma.done.wait [#allocation3], 1024  }
   0xe   :  { %355 = vsyncadd [#allocation3], 4294966272  ;;  %v361_v0 = vmov 0.0   ;;  %vm362_vm0 = vmmov 0   ;;  %v304_v1 = vld [vmem:[%s424_s1 + $0x8] sm:$0xff]   ;;  %v305_v2 = vld [vmem:[%s424_s1] sm:$0xff]  }
   0xf   :  { %270 = vmatprep.subr.bf16.mxu0 %v361_v0  ;;  %274 = vmatprep.mubr.msk.bf16.mxu0 %vm362_vm0, %v361_v0  ;;  %v306_v3 = vld [vmem:[#allocation2 + $0x38] sm:$0xff]   ;;  %vm81_vm1 = vcmask 261120   ;;  %v307_v4 = vld [vmem:[#allocation2 + $0x30] sm:$0xff]   ;;  %v39_v5 = vld [vmem:[%s423_s0] sm:$0xf] }
  0x10   :  { %278 = vmatprep.subr.bf16.mxu1 %v361_v0  ;;  %294 = vmatprep.mubr.msk.bf16.mxu1 %vm362_vm0, %v361_v0  ;;  %v308_v6 = vld [vmem:[#allocation2 + $0x28] sm:$0xff]   ;;  %v309_v7 = vld [vmem:[#allocation2 + $0x20] sm:$0xff]   ;;  %v310_v8 = vld [vmem:[#allocation2 + $0x18] sm:$0xff]  }
  0x11   :  { %271 = vmatpush3.bf16.msra.mxu0 %v304_v1  ;;  %279 = vmatpush3.bf16.msra.mxu1 %v306_v3  ;;  %v311_v9 = vld [vmem:[#allocation2 + $0x10] sm:$0xff]   ;;  %v312_v10 = vld [vmem:[#allocation2 + $0x8] sm:$0xff]   ;;  %v313_v11 = vld [vmem:[#allocation2] sm:$0xff]  }
  0x12   :  { %272 = vmatprep.subr.bf16.mxu0 %v361_v0  ;;  %280 = vmatprep.subr.bf16.mxu1 %v361_v0  ;;  %v242_v12 = vld [vmem:[%s425_s2] ss:$0 sm:$0xff]  ;;  %s363_s2 = smov [#allocation5]  }
  0x13   :  { %v62_v15 = vld [vmem:[%s428_s5] sm:$0xff]  ;;  %s233_s13 = sshll.u32 %s363_s2, 4  ;;  %s234_s13 = int_to_ptr.vmem [resolvable:$true] %s233_s13 }
  0x14   :  { %vm128_vm3 = vcmp.ge.u32.totalorder %v62_v15, 429496730  ;;  %v246_v23 = vld [vmem:[%s427_s4] ss:$0 sm:$0xff]  ;;  %s334_s5 = scalar_lea.vmem %s234_s13, 128  ;;  %p339_p6 = scmp.lt.s32.totalorder %s234_s13, %s234_s13 }
  0x15   :  { %273 = vmatpush3.bf16.msra.mxu0 %v305_v2  ;;  %281 = vmatpush3.bf16.msra.mxu1 %v307_v4  ;;  %vm255_vm4 = vmpackc.low %vm128_vm3, %vm128_vm3  ;;  %p335_p5 = scmp.ne.s32.totalorder %s234_s13, %s334_s5  ;;  %p340_p7 = scmp.lt.s32.totalorder %s334_s5, %s334_s5 }
  0x16   :  { %282 = vmatprep.subr.bf16.mxu1 %v361_v0 }
  0x17   :  { %p341_p8 = por %p340_p7, %p339_p6 }
  0x18   :  { %275 = vmatmul.mubr.msk.bf16.vlgmr.msra.gmra.mxu0 %vm81_vm1, %v39_v5 }
  0x19   :  { %283 = vmatpush3.bf16.msra.mxu1 %v308_v6  ;;  %p342_p9 = pnand %p341_p8, %p335_p5 }
  0x1a   :  { %284 = vmatprep.subr.bf16.mxu1 %v361_v0 }
  0x1d   :  { %285 = vmatpush3.bf16.msra.mxu1 %v309_v7 }
  0x1e   :  { %286 = vmatprep.subr.bf16.mxu1 %v361_v0 }
  0x21   :  { %287 = vmatpush3.bf16.msra.mxu1 %v310_v8 }
  0x22   :  { %288 = vmatprep.subr.bf16.mxu1 %v361_v0 }
  0x25   :  { %289 = vmatpush3.bf16.msra.mxu1 %v311_v9 }
  0x26   :  { %290 = vmatprep.subr.bf16.mxu1 %v361_v0 }
  0x29   :  { %291 = vmatpush3.bf16.msra.mxu1 %v312_v10 }
  0x2a   :  { %292 = vmatprep.subr.bf16.mxu1 %v361_v0 }
  0x2d   :  { %293 = vmatpush3.bf16.msra.mxu1 %v313_v11 }
  0xd8   :  { %v119_v13 = vpop.f32.mrf.mxu0 }
  0xd9   :  { %v120_v14 = vadd.f32 %v242_v12, %v119_v13 }
  0xda   :  { %v276_v16 = vpop.f32.mrf.mxu0 }
  0xdb   :  { %vm125_vm2 = vcmp.gt.f32.partialorder %v120_v14, 0.0  ;;  %v126_v17 = vmul.f32 0.01, %v120_v14 }
  0xdc   :  { %v122_v18 = vpop.f32.mrf.mxu0 }
  0xdd   :  { %v127_v19 = vsel %vm125_vm2, %v120_v14, %v126_v17 }
  0xde   :  { %v129_v20 = vmul.f32 1.1111112, %v127_v19  ;;  %v277_v21 = vpop.f32.mrf.mxu0 }
  0xe0   :  { %v256_v22 = vpack.c.bf16 %v129_v20, %v129_v20 }
  0xe2   :  { %295 = vmatmul.mubr.msk.bf16.vlgmr.msra.gmra.mxu1 %vm255_vm4, %v256_v22 }
 0x1a2   :  { %v220_v24 = vpop.f32.mrf.mxu1 }
 0x1a3   :  { %v221_v25 = vadd.f32 %v246_v23, %v220_v24 }
 0x1a4   :  { %v296_v26 = vpop.f32.mrf.mxu1 }
 0x1a5   :  { %226 = vst [vmem:[#allocation5] sm:$0xff] %v221_v25 }
 0x1a6   :  { %v223_v27 = vpop.f32.mrf.mxu1 }
 0x1a7   :  { %345 = shalt.err (!%p342_p9)
}
 0x1a8   :  { %236 = dma.vmem_to_hbm [thread:$0]  %s234_s13, 128, %s429_s6, [#allocation4]   ;;  %v297_v28 = vpop.f32.mrf.mxu1 }
 0x1a9   :  { %356 = dma.done.wait [#allocation4], 128  }
 0x1aa   :  { %357 = vsyncadd [#allocation4], 4294967168 }
 0x1ab   :  { %240 = vsyncpa [#allocation3], 1 }
 0x1ac   :  { %241 = vsyncpa [#allocation4], 1 }

</bundles_post_ra>
